<compile_context>
chip_gen: v6e
topology: v6e:2x2x1
jax: 0.10.0
libtpu: 0.0.40
codegen_flags: <defaults>
</compile_context>

<pallas_src>
import jax
import jax.numpy as jnp
from jax.experimental import pallas as pl
from jax.experimental.pallas import tpu as pltpu

_BN_EPS = 1e-5
_LANE = 128
_SUBLANE = 8


def _round_up(x, m):
    return (x + m - 1) // m * m


def _td_apply_kernel(x_ref, scale_ref, shift_ref, w_ref, b_ref, o_ref):
    """Fused BN-apply -> ReLU -> 1x1 conv (stacked MXU matmul) -> 2x2 max-pool.

    x_ref:              (4, TM, C)   4 window positions for TM output pixels
    scale/shift/b_ref:  (1, C)       folded BN scale/shift, conv bias (resident across grid)
    w_ref:              (C, C)       1x1 conv weight as (C_in, C_out) (resident across grid)
    o_ref:              (TM, C)
    """
    P, TM, C = x_ref.shape
    # Stack the 4 window positions along sublanes -> one long MXU push instead of 4 short ones.
    x = x_ref[...].reshape(P * TM, C)
    y = jnp.maximum(x * scale_ref[...] + shift_ref[...], 0.0)          # BN + ReLU (f32 VPU)
    # NOTE: on v6e/v7x, casting y / w to bf16 here (keeping preferred f32) would halve MXU feed
    # bytes; kept in f32 to match the f32 reference tightly.
    z = jnp.dot(y, w_ref[...], preferred_element_type=jnp.float32) + b_ref[...]
    # 2x2 max-pool == reduce-max over the window-position axis.
    o_ref[...] = jnp.max(z.reshape(P, TM, C), axis=0).astype(o_ref.dtype)


def transition_down(x_nchw, gamma, beta, conv_w, conv_b, *, tm=512):
    """x_nchw: (N, C, H, W) float32. Returns (N, C, H//2, W//2) float32."""
    N, C, H, W = x_nchw.shape
    assert H % 2 == 0 and W % 2 == 0, "MaxPool2d(2) with even spatial dims assumed"
    H2, W2 = H // 2, W // 2
    M = N * H2 * W2

    x_nchw = x_nchw.astype(jnp.float32)

    # ---- BatchNorm2d statistics (training mode), hoisted out of the kernel ----
    mean = jnp.mean(x_nchw, axis=(0, 2, 3))                      # (C,)
    var = jnp.var(x_nchw, axis=(0, 2, 3))                        # biased, like torch BN normalization
    inv_std = jax.lax.rsqrt(var + _BN_EPS)
    scale = gamma.astype(jnp.float32) * inv_std                  # (C,)
    shift = beta.astype(jnp.float32) - mean * scale              # (C,)

    # ---- padding / tiling choices ----
    Cp = _round_up(C, _LANE)                                     # lane-dense channels
    TM = min(tm, _round_up(M, _SUBLANE))                         # pixels per tile
    Mp = _round_up(M, TM)

    # glue: NCHW -> NHWC -> split 2x2 windows -> (4, M, C) -> pad to (4, Mp, Cp)
    # TODO(synk): the 2x2-window gather could be expressed with four in_specs on the NHWC tensor to
    # avoid this XLA transpose materialization; kept as wrapper glue for simplicity.
    x = jnp.transpose(x_nchw, (0, 2, 3, 1))                      # (N, H, W, C)
    x = x.reshape(N, H2, 2, W2, 2, C)
    x = jnp.transpose(x, (2, 4, 0, 1, 3, 5)).reshape(4, M, C)    # (4, M, C)
    x = jnp.pad(x, ((0, 0), (0, Mp - M), (0, Cp - C)))

    scale_p = jnp.zeros((1, Cp), jnp.float32).at[0, :C].set(scale)
    shift_p = jnp.zeros((1, Cp), jnp.float32).at[0, :C].set(shift)
    bias_p = jnp.zeros((1, Cp), jnp.float32).at[0, :C].set(conv_b.astype(jnp.float32))
    wk = conv_w[:, :, 0, 0].T.astype(jnp.float32)                # (C_in, C_out): out = y @ wk + b
    w_p = jnp.zeros((Cp, Cp), jnp.float32).at[:C, :C].set(wk)

    # explicit VMEM budget: double-buffered in/out blocks + resident params + headroom
    in_block = 4 * TM * Cp * 4
    out_block = TM * Cp * 4
    param_bytes = (Cp * Cp + 3 * Cp) * 4
    vmem_limit = int(2 * in_block + 2 * out_block + 2 * param_bytes + (4 << 20))

    out2d = pl.pallas_call(
        _td_apply_kernel,
        out_shape=jax.ShapeDtypeStruct((Mp, Cp), jnp.float32),
        grid=(Mp // TM,),
        in_specs=[
            pl.BlockSpec((4, TM, Cp), lambda i: (0, i, 0)),      # x tile (pipelined over M)
            pl.BlockSpec((1, Cp), lambda i: (0, 0)),             # scale (resident)
            pl.BlockSpec((1, Cp), lambda i: (0, 0)),             # shift (resident)
            pl.BlockSpec((Cp, Cp), lambda i: (0, 0)),            # conv weight (resident)
            pl.BlockSpec((1, Cp), lambda i: (0, 0)),             # conv bias (resident)
        ],
        out_specs=pl.BlockSpec((TM, Cp), lambda i: (i, 0)),
        compiler_params=pltpu.CompilerParams(
            dimension_semantics=("parallel",),
            vmem_limit_bytes=vmem_limit,
        ),
    )(x, scale_p, shift_p, w_p, bias_p)

    # glue: (Mp, Cp) -> strip padding -> (N, H2, W2, C) -> NCHW
    out = out2d[:M, :C].reshape(N, H2, W2, C)
    return jnp.transpose(out, (0, 3, 1, 2))


def _reference(x, gamma, beta, conv_w, conv_b):
    # plain-JAX reference of the PyTorch forward (training-mode BN)
    mean = x.mean(axis=(0, 2, 3), keepdims=True)
    var = x.var(axis=(0, 2, 3), keepdims=True)                   # biased, like torch BN normalization
    y = (x - mean) / jnp.sqrt(var + _BN_EPS) * gamma.reshape(1, -1, 1, 1) + beta.reshape(1, -1, 1, 1)
    y = jnp.maximum(y, 0.0)
    z = jnp.einsum("nchw,dc->ndhw", y, conv_w[:, :, 0, 0]) + conv_b.reshape(1, -1, 1, 1)
    N, C, H, W = z.shape
    return z.reshape(N, C, H // 2, 2, W // 2, 2).max(axis=(3, 5))


if __name__ == "__main__":
    N, C, H, W = 2, 4, 16, 16
    key = jax.random.PRNGKey(0)
    kx, kg, kb, kw, kc = jax.random.split(key, 5)

    x = jax.random.normal(kx, (N, C, H, W), dtype=jnp.float32)
    # deterministic "parameters" (synthetic; shapes from the module __init__)
    gamma = jax.random.uniform(kg, (C,), dtype=jnp.float32, minval=0.5, maxval=1.5)  # BN weight
    beta = jax.random.normal(kb, (C,), dtype=jnp.float32) * 0.1                      # BN bias
    conv_w = jax.random.normal(kw, (C, C, 1, 1), dtype=jnp.float32) * (1.0 / jnp.sqrt(C))
    conv_b = jax.random.normal(kc, (C,), dtype=jnp.float32) * 0.1

    out = transition_down(x, gamma, beta, conv_w, conv_b)
    out = jax.block_until_ready(out)

    ref = _reference(x, gamma, beta, conv_w, conv_b)
    assert out.shape == (N, C, H // 2, W // 2), out.shape
    assert jnp.allclose(out, ref, atol=2e-3, rtol=2e-3), float(jnp.max(jnp.abs(out - ref)))

    print("KERNEL_OK")
</pallas_src>

<mosaic_0001>
module attributes {stable_mosaic.version = 11 : i64} {
  func.func @_td_apply_kernel(%arg0: i32, %arg1: memref<4x128x128xf32, #tpu.memory_space<vmem>>, %arg2: memref<1x128xf32, #tpu.memory_space<vmem>>, %arg3: memref<1x128xf32, #tpu.memory_space<vmem>>, %arg4: memref<128x128xf32, #tpu.memory_space<vmem>>, %arg5: memref<1x128xf32, #tpu.memory_space<vmem>>, %arg6: memref<128x128xf32, #tpu.memory_space<vmem>>) attributes {dimension_semantics = [#tpu.dimension_semantics<parallel>], iteration_bounds = array<i64: 1>, scalar_prefetch = 0 : i64, scratch_operands = 0 : i64, tpu.core_type = #tpu.core_type<tc>, window_params = [{transform_indices = @transform_0, window_bounds = array<i64: 4, 128, 128>}, {pipeline_mode = #tpu.pipeline_mode<synchronous>, transform_indices = @transform_1, window_bounds = array<i64: 1, 128>}, {pipeline_mode = #tpu.pipeline_mode<synchronous>, transform_indices = @transform_2, window_bounds = array<i64: 1, 128>}, {pipeline_mode = #tpu.pipeline_mode<synchronous>, transform_indices = @transform_3, window_bounds = array<i64: 128, 128>}, {pipeline_mode = #tpu.pipeline_mode<synchronous>, transform_indices = @transform_4, window_bounds = array<i64: 1, 128>}, {transform_indices = @transform_5, window_bounds = array<i64: 128, 128>}]} {
    %c0 = arith.constant 0 : index
    %c0_0 = arith.constant 0 : index
    %c0_1 = arith.constant 0 : index
    %0 = vector.load %arg1[%c0, %c0_0, %c0_1] : memref<4x128x128xf32, #tpu.memory_space<vmem>>, vector<4x128x128xf32>
    %1 = vector.shape_cast %0 : vector<4x128x128xf32> to vector<512x128xf32>
    %c0_2 = arith.constant 0 : index
    %c0_3 = arith.constant 0 : index
    %2 = vector.load %arg2[%c0_2, %c0_3] : memref<1x128xf32, #tpu.memory_space<vmem>>, vector<1x128xf32>
    %3 = vector.broadcast %2 : vector<1x128xf32> to vector<512x128xf32>
    %4 = arith.mulf %1, %3 : vector<512x128xf32>
    %c0_4 = arith.constant 0 : index
    %c0_5 = arith.constant 0 : index
    %5 = vector.load %arg3[%c0_4, %c0_5] : memref<1x128xf32, #tpu.memory_space<vmem>>, vector<1x128xf32>
    %6 = vector.broadcast %5 : vector<1x128xf32> to vector<512x128xf32>
    %7 = arith.addf %4, %6 : vector<512x128xf32>
    %cst = arith.constant 0.000000e+00 : f32
    %8 = vector.broadcast %cst : f32 to vector<512x128xf32>
    %9 = arith.maximumf %7, %8 : vector<512x128xf32>
    %c0_6 = arith.constant 0 : index
    %c0_7 = arith.constant 0 : index
    %10 = vector.load %arg4[%c0_6, %c0_7] : memref<128x128xf32, #tpu.memory_space<vmem>>, vector<128x128xf32>
    %cst_8 = arith.constant dense<0.000000e+00> : vector<512x128xf32>
    %11 = tpu.matmul %9, %10, %cst_8 {dimension_numbers = #tpu.dot_dimension_numbers<[1], [0], [0], [1], [0, 0, 1, 1], [], []>} : vector<512x128xf32>, vector<128x128xf32>, vector<512x128xf32> -> vector<512x128xf32>
    %c0_9 = arith.constant 0 : index
    %c0_10 = arith.constant 0 : index
    %12 = vector.load %arg5[%c0_9, %c0_10] : memref<1x128xf32, #tpu.memory_space<vmem>>, vector<1x128xf32>
    %13 = vector.broadcast %12 : vector<1x128xf32> to vector<512x128xf32>
    %14 = arith.addf %11, %13 : vector<512x128xf32>
    %15 = vector.shape_cast %14 : vector<512x128xf32> to vector<4x128x128xf32>
    %cst_11 = arith.constant dense<0xFF800000> : vector<128x128xf32>
    %16 = vector.multi_reduction <maximumf>, %15, %cst_11 [0] : vector<4x128x128xf32> to vector<128x128xf32>
    %c0_12 = arith.constant 0 : index
    %c0_13 = arith.constant 0 : index
    %17 = vector.load %arg6[%c0_12, %c0_13] : memref<128x128xf32, #tpu.memory_space<vmem>>, vector<128x128xf32>
    tpu.vector_store %arg6[%c0_12, %c0_13], %16 {strides = array<i32>} : memref<128x128xf32, #tpu.memory_space<vmem>>, vector<128x128xf32>,
    return
  }
  func.func @transform_0(%arg0: i32) -> (i32, i32, i32) {
    %c0_i32 = arith.constant 0 : i32
    %c0_i32_0 = arith.constant 0 : i32
    %c0_i32_1 = arith.constant 0 : i32
    return %c0_i32, %arg0, %c0_i32_0 : i32, i32, i32
  }
  func.func @transform_1(%arg0: i32) -> (i32, i32) {
    %c0_i32 = arith.constant 0 : i32
    %c0_i32_0 = arith.constant 0 : i32
    %c0_i32_1 = arith.constant 0 : i32
    return %c0_i32, %c0_i32_0 : i32, i32
  }
  func.func @transform_2(%arg0: i32) -> (i32, i32) {
    %c0_i32 = arith.constant 0 : i32
    %c0_i32_0 = arith.constant 0 : i32
    %c0_i32_1 = arith.constant 0 : i32
    return %c0_i32, %c0_i32_0 : i32, i32
  }
  func.func @transform_3(%arg0: i32) -> (i32, i32) {
    %c0_i32 = arith.constant 0 : i32
    %c0_i32_0 = arith.constant 0 : i32
    %c0_i32_1 = arith.constant 0 : i32
    return %c0_i32, %c0_i32_0 : i32, i32
  }
  func.func @transform_4(%arg0: i32) -> (i32, i32) {
    %c0_i32 = arith.constant 0 : i32
    %c0_i32_0 = arith.constant 0 : i32
    %c0_i32_1 = arith.constant 0 : i32
    return %c0_i32, %c0_i32_0 : i32, i32
  }
  func.func @transform_5(%arg0: i32) -> (i32, i32) {
    %c0_i32 = arith.constant 0 : i32
    %c0_i32_0 = arith.constant 0 : i32
    return %arg0, %c0_i32 : i32, i32
  }
}

</mosaic_0001>

<bundles_post_ra>
// kernel: tpu_custom_call.1
= control target key start
LH: loop header
LB: loop body
LE: loop exit
PB: predicated region body
PF: predicated region fallthrough
CT: control target
= control target key end

     0   :  { %10 = vsyncpa [#allocation3], 0  ;;  %s1449_s0 = inlined_call_operand.hbm [shape: f32[4,128,128], index: 0, kind: input, shape index: {}]   ;;  %s1450_s1 = inlined_call_operand.vmem [shape: f32[1,128], index: 1, kind: input, shape index: {}]   ;;  %s1451_s2 = inlined_call_operand.vmem [shape: f32[1,128], index: 2, kind: input, shape index: {}]   ;;  %s1452_s3 = inlined_call_operand.hbm [shape: f32[128,128], index: 3, kind: input, shape index: {}]   ;;  %s1453_s4 = inlined_call_operand.vmem [shape: f32[1,128], index: 4, kind: input, shape index: {}]   ;;  %s1454_s5 = inlined_call_operand.hbm [shape: f32[128,128], index: 5, kind: output, shape index: {}]  }
   0x1   :  { %11 = vsyncpa [#allocation6], 0 }
   0x2   :  { %12 = vsyncpa [#allocation4], 0  ;;  %s1123_s18 = smov [#allocation2]  }
   0x3   :  { %s18_s19 = sshll.u32 %s1123_s18, 4  ;;  %s19_s19 = int_to_ptr.vmem [resolvable:$true] %s18_s19 }
   0x4   :  { %s1065_s20 = scalar_lea.vmem %s19_s19, 8192  ;;  %p1070_p1 = scmp.lt.s32.totalorder %s19_s19, %s19_s19 }
   0x5   :  { %p1066_p0 = scmp.ne.s32.totalorder %s19_s19, %s1065_s20  ;;  %p1071_p2 = scmp.lt.s32.totalorder %s1065_s20, %s1065_s20 }
   0x7   :  { %p1072_p3 = por %p1071_p2, %p1070_p1 }
   0x9   :  { %p1073_p4 = pnand %p1072_p3, %p1066_p0 }
   0xb   :  { %1076 = shalt.err (!%p1073_p4)
}
   0xc   :  { %s1124_s21 = smov 128   ;;  %s1125_s22 = smov 8  }
   0xd   :  { %24 = dma.hbm_to_vmem [thread:$0]  %s1449_s0, 8192, %s19_s19, [#allocation3], %s1124_s21, %s1124_s21, %s1125_s22  }
   0xe   :  { %s1126_s25 = smov [#allocation5]  }
   0xf   :  { %s34_s26 = sshll.u32 %s1126_s25, 4  ;;  %s35_s26 = int_to_ptr.vmem [resolvable:$true] %s34_s26 }
  0x10   :  { %s1085_s27 = scalar_lea.vmem %s35_s26, 2048  ;;  %p1090_p6 = scmp.lt.s32.totalorder %s35_s26, %s35_s26 }
  0x11   :  { %p1086_p5 = scmp.ne.s32.totalorder %s35_s26, %s1085_s27  ;;  %p1091_p7 = scmp.lt.s32.totalorder %s1085_s27, %s1085_s27 }
  0x13   :  { %p1092_p8 = por %p1091_p7, %p1090_p6 }
  0x15   :  { %p1093_p9 = pnand %p1092_p8, %p1086_p5 }
  0x17   :  { %1096 = shalt.err (!%p1093_p9)
}
  0x18   :  { %40 = dma.hbm_to_vmem [thread:$0]  %s1452_s3, 2048, %s35_s26, [#allocation6], %s1124_s21, %s1124_s21, %s1125_s22  }
  0x19   :  { %1117 = dma.done.wait [#allocation3], 8192  }
  0x1a   :  { %1118 = vsyncadd [#allocation3], 4294959104 }
  0x1b   :  { %1119 = dma.done.wait [#allocation6], 2048  }
  0x1c   :  { %1120 = vsyncadd [#allocation6], 4294965248  ;;  %v334_v0 = vld [vmem:[#allocation5 + $0x78] sm:$0xff]  ;;  %v333_v1 = vld [vmem:[#allocation5 + $0x70] sm:$0xff] }
  0x1d   :  { %892 = vmatprep.subr.mxu0 %v334_v0  ;;  %1020 = vmatprep.subr.mxu1 %v334_v0  ;;  %v332_v2 = vld [vmem:[#allocation5 + $0x68] sm:$0xff]  ;;  %v331_v3 = vld [vmem:[#allocation5 + $0x60] sm:$0xff]  ;;  %v330_v4 = vld [vmem:[#allocation5 + $0x58] sm:$0xff] }
  0x1e   :  { %893 = vmatpush3.msra.mxu0 %v334_v0  ;;  %1036 = vmatpush3.msra.mxu1 %v334_v0  ;;  %v329_v5 = vld [vmem:[#allocation5 + $0x50] sm:$0xff]  ;;  %v328_v6 = vld [vmem:[#allocation5 + $0x48] sm:$0xff]  ;;  %v327_v7 = vld [vmem:[#allocation5 + $0x40] sm:$0xff] }
  0x1f   :  { %894 = vmatprep.subr.mxu0 %v333_v1  ;;  %1021 = vmatprep.subr.mxu1 %v333_v1  ;;  %v326_v8 = vld [vmem:[#allocation5 + $0x38] sm:$0xff]  ;;  %v325_v9 = vld [vmem:[#allocation5 + $0x30] sm:$0xff]  ;;  %v49_v10 = vld [vmem:[#allocation2] sm:$0xff] }
  0x20   :  { %895 = vmatpush3.msra.mxu0 %v333_v1  ;;  %1037 = vmatpush3.msra.mxu1 %v333_v1  ;;  %v1173_v11 = vld [vmem:[%s1450_s1] ss:$0 sm:$0xff]  ;;  %v324_v12 = vld [vmem:[#allocation5 + $0x28] sm:$0xff]  ;;  %v51_v16 = vld [vmem:[#allocation2 + $0x10] sm:$0xff] }
  0x21   :  { %896 = vmatprep.subr.mxu0 %v332_v2  ;;  %1022 = vmatprep.subr.mxu1 %v332_v2  ;;  %v50_v13 = vld [vmem:[#allocation2 + $0x8] sm:$0xff]  ;;  %v120_v14 = vmul.f32 %v1173_v11, %v49_v10  ;;  %v81_v15 = vld [vmem:[#allocation2 + $0x100] sm:$0xff]  ;;  %v83_v21 = vld [vmem:[#allocation2 + $0x110] sm:$0xff]  ;;  %v122_v24 = vmul.f32 %v1173_v11, %v51_v16 }
  0x22   :  { %897 = vmatpush3.msra.mxu0 %v332_v2  ;;  %1038 = vmatpush3.msra.mxu1 %v332_v2  ;;  %v323_v17 = vld [vmem:[#allocation5 + $0x20] sm:$0xff]  ;;  %v82_v19 = vld [vmem:[#allocation2 + $0x108] sm:$0xff]  ;;  %v121_v20 = vmul.f32 %v1173_v11, %v50_v13  ;;  %v322_v22 = vld [vmem:[#allocation5 + $0x18] sm:$0xff]  ;;  %v152_v23 = vmul.f32 %v1173_v11, %v81_v15  ;;  %v154_v30 = vmul.f32 %v1173_v11, %v83_v21 }
  0x23   :  { %898 = vmatprep.subr.mxu0 %v331_v3  ;;  %1023 = vmatprep.subr.mxu1 %v331_v3  ;;  %v1179_v18 = vld [vmem:[%s1451_s2] ss:$0 sm:$0xff]  ;;  %v52_v25 = vld [vmem:[#allocation2 + $0x18] sm:$0xff]  ;;  %v153_v27 = vmul.f32 %v1173_v11, %v82_v19  ;;  %v321_v29 = vld [vmem:[#allocation5 + $0x10] sm:$0xff] }
  0x24   :  { %899 = vmatpush3.msra.mxu0 %v331_v3  ;;  %1039 = vmatpush3.msra.mxu1 %v331_v3  ;;  %v191_v26 = vadd.f32 %v1179_v18, %v120_v14  ;;  %v53_v28 = vld [vmem:[#allocation2 + $0x20] sm:$0xff]  ;;  %v84_v31 = vld [vmem:[#allocation2 + $0x118] sm:$0xff]  ;;  %v192_v32 = vadd.f32 %v1179_v18, %v121_v20  ;;  %v123_v33 = vmul.f32 %v1173_v11, %v52_v25  ;;  %v320_v35 = vld [vmem:[#allocation5 + $0x8] sm:$0xff] }
  0x25   :  { %900 = vmatprep.subr.mxu0 %v330_v4  ;;  %1024 = vmatprep.subr.mxu1 %v330_v4  ;;  %v85_v34 = vld [vmem:[#allocation2 + $0x120] sm:$0xff]  ;;  %v223_v36 = vadd.f32 %v1179_v18, %v152_v23  ;;  %v193_v37 = vadd.f32 %v1179_v18, %v122_v24  ;;  %v124_v38 = vmul.f32 %v1173_v11, %v53_v28  ;;  %v54_v39 = vld [vmem:[#allocation2 + $0x28] sm:$0xff]  ;;  %v55_v43 = vld [vmem:[#allocation2 + $0x30] sm:$0xff] }
  0x26   :  { %901 = vmatpush3.msra.mxu0 %v330_v4  ;;  %1040 = vmatpush3.msra.mxu1 %v330_v4  ;;  %v255_v40 = vmax.f32 %v191_v26, 0.0  ;;  %v224_v41 = vadd.f32 %v1179_v18, %v153_v27  ;;  %v155_v42 = vmul.f32 %v1173_v11, %v84_v31  ;;  %v319_v44 = vld [vmem:[#allocation5] sm:$0xff]  ;;  %v225_v45 = vadd.f32 %v1179_v18, %v154_v30  ;;  %v86_v47 = vld [vmem:[#allocation2 + $0x128] sm:$0xff]  ;;  %v87_v51 = vld [vmem:[#allocation2 + $0x130] sm:$0xff] }
  0x27   :  { %902 = vmatprep.subr.mxu0 %v329_v5  ;;  %1025 = vmatprep.subr.mxu1 %v329_v5  ;;  %v156_v46 = vmul.f32 %v1173_v11, %v85_v34  ;;  %v256_v48 = vmax.f32 %v192_v32, 0.0  ;;  %v194_v49 = vadd.f32 %v1179_v18, %v123_v33  ;;  %v125_v50 = vmul.f32 %v1173_v11, %v54_v39  ;;  %v56_v56 = vld [vmem:[#allocation2 + $0x38] sm:$0xff]  ;;  %v57_v60 = vld [vmem:[#allocation2 + $0x40] sm:$0xff]  ;;  %v59_v13 = vld [vmem:[#allocation2 + $0x50] sm:$0xff] }
  0x28   :  { %903 = vmatpush3.msra.mxu0 %v329_v5  ;;  %1041 = vmatpush3.msra.mxu1 %v329_v5  ;;  %v287_v52 = vmax.f32 %v223_v36, 0.0  ;;  %v257_v53 = vmax.f32 %v193_v37, 0.0  ;;  %v195_v54 = vadd.f32 %v1179_v18, %v124_v38  ;;  %v126_v55 = vmul.f32 %v1173_v11, %v55_v43  ;;  %v88_v0 = vld [vmem:[#allocation2 + $0x138] sm:$0xff]  ;;  %v89_v4 = vld [vmem:[#allocation2 + $0x140] sm:$0xff] }
  0x29   :  { %904 = vmatprep.subr.mxu0 %v328_v6  ;;  %1026 = vmatprep.subr.mxu1 %v328_v6  ;;  %v288_v57 = vmax.f32 %v224_v41, 0.0  ;;  %v226_v58 = vadd.f32 %v1179_v18, %v155_v42  ;;  %v157_v59 = vmul.f32 %v1173_v11, %v86_v47  ;;  %v289_v61 = vmax.f32 %v225_v45, 0.0  ;;  %v60_v26 = vld [vmem:[#allocation2 + $0x58] sm:$0xff]  ;;  %v61_v30 = vld [vmem:[#allocation2 + $0x60] sm:$0xff]  ;;  %v62_v42 = vld [vmem:[#allocation2 + $0x68] sm:$0xff] }
  0x2a   :  { %905 = vmatpush3.msra.mxu0 %v328_v6  ;;  %1042 = vmatpush3.msra.mxu1 %v328_v6  ;;  %v227_v62 = vadd.f32 %v1179_v18, %v156_v46  ;;  %v158_v63 = vmul.f32 %v1173_v11, %v87_v51  ;;  %v258_v1 = vmax.f32 %v194_v49, 0.0  ;;  %v196_v2 = vadd.f32 %v1179_v18, %v125_v50  ;;  %v92_v34 = vld [vmem:[#allocation2 + $0x158] sm:$0xff]  ;;  %v93_v38 = vld [vmem:[#allocation2 + $0x160] sm:$0xff]  ;;  %v63_v46 = vld [vmem:[#allocation2 + $0x70] sm:$0xff] }
  0x2b   :  { %906 = vmatprep.subr.mxu0 %v327_v7  ;;  %1027 = vmatprep.subr.mxu1 %v327_v7  ;;  %v127_v3 = vmul.f32 %v1173_v11, %v56_v56  ;;  %v259_v5 = vmax.f32 %v195_v54, 0.0  ;;  %v197_v6 = vadd.f32 %v1179_v18, %v126_v55  ;;  %v228_v10 = vadd.f32 %v1179_v18, %v157_v59  ;;  %v94_v50 = vld [vmem:[#allocation2 + $0x168] sm:$0xff]  ;;  %v95_v54 = vld [vmem:[#allocation2 + $0x170] sm:$0xff] }
  0x2c   :  { %907 = vmatpush3.msra.mxu0 %v327_v7  ;;  %1043 = vmatpush3.msra.mxu1 %v327_v7  ;;  %v128_v7 = vmul.f32 %v1173_v11, %v57_v60  ;;  %v291_v14 = vmax.f32 %v227_v62, 0.0  ;;  %v229_v15 = vadd.f32 %v1179_v18, %v158_v63  ;;  %v160_v16 = vmul.f32 %v1173_v11, %v89_v4  ;;  %v65_v62 = vld [vmem:[#allocation2 + $0x80] sm:$0xff] }
  0x2d   :  { %908 = vmatprep.subr.mxu0 %v326_v8  ;;  %1028 = vmatprep.subr.mxu1 %v326_v8  ;;  %v260_v19 = vmax.f32 %v196_v2, 0.0  ;;  %v198_v20 = vadd.f32 %v1179_v18, %v127_v3  ;;  %v261_v23 = vmax.f32 %v197_v6, 0.0  ;;  %v130_v25 = vmul.f32 %v1173_v11, %v59_v13  ;;  %v96_v2 = vld [vmem:[#allocation2 + $0x178] sm:$0xff]  ;;  %v97_v6 = vld [vmem:[#allocation2 + $0x180] sm:$0xff] }
  0x2e   :  { %909 = vmatpush3.msra.mxu0 %v326_v8  ;;  %1044 = vmatpush3.msra.mxu1 %v326_v8  ;;  %v58_v8 = vld [vmem:[#allocation2 + $0x48] sm:$0xff]  ;;  %v199_v24 = vadd.f32 %v1179_v18, %v128_v7  ;;  %v292_v27 = vmax.f32 %v228_v10, 0.0  ;;  %v293_v31 = vmax.f32 %v229_v15, 0.0  ;;  %v231_v32 = vadd.f32 %v1179_v18, %v160_v16  ;;  %v67_v16 = vld [vmem:[#allocation2 + $0x90] sm:$0xff] }
  0x2f   :  { %910 = vmatprep.subr.mxu0 %v325_v9  ;;  %1029 = vmatprep.subr.mxu1 %v325_v9  ;;  %v129_v21 = vmul.f32 %v1173_v11, %v58_v8  ;;  %v131_v37 = vmul.f32 %v1173_v11, %v60_v26  ;;  %v132_v41 = vmul.f32 %v1173_v11, %v61_v30  ;;  %v66_v10 = vld [vmem:[#allocation2 + $0x88] sm:$0xff]  ;;  %v68_v30 = vld [vmem:[#allocation2 + $0x98] sm:$0xff] }
  0x30   :  { %911 = vmatpush3.msra.mxu0 %v325_v9  ;;  %1045 = vmatpush3.msra.mxu1 %v325_v9  ;;  %v290_v9 = vmax.f32 %v226_v58, 0.0  ;;  %v263_v39 = vmax.f32 %v199_v24, 0.0  ;;  %v163_v45 = vmul.f32 %v1173_v11, %v92_v34  ;;  %v295_v47 = vmax.f32 %v231_v32, 0.0  ;;  %v64_v58 = vld [vmem:[#allocation2 + $0x78] sm:$0xff]  ;;  %v69_v34 = vld [vmem:[#allocation2 + $0xa0] sm:$0xff] }
  0x31   :  { %912 = vmatprep.subr.mxu0 %v324_v12  ;;  %1030 = vmatprep.subr.mxu1 %v324_v12  ;;  %v200_v36 = vadd.f32 %v1179_v18, %v129_v21  ;;  %v164_v49 = vmul.f32 %v1173_v11, %v93_v38  ;;  %v203_v56 = vadd.f32 %v1179_v18, %v132_v41  ;;  %v98_v21 = vld [vmem:[#allocation2 + $0x188] sm:$0xff] }
  0x32   :  { %913 = vmatpush3.msra.mxu0 %v324_v12  ;;  %1046 = vmatpush3.msra.mxu1 %v324_v12  ;;  %v159_v12 = vmul.f32 %v1173_v11, %v88_v0  ;;  %v234_v60 = vadd.f32 %v1179_v18, %v163_v45  ;;  %v167_v15 = vmul.f32 %v1173_v11, %v96_v2 }
  0x33   :  { %914 = vmatprep.subr.mxu0 %v323_v17  ;;  %1031 = vmatprep.subr.mxu1 %v323_v17  ;;  %v264_v51 = vmax.f32 %v200_v36, 0.0  ;;  %v235_v0 = vadd.f32 %v1179_v18, %v164_v49  ;;  %v267_v7 = vmax.f32 %v203_v56, 0.0  ;;  %v137_v24 = vmul.f32 %v1173_v11, %v66_v10 }
  0x34   :  { %915 = vmatpush3.msra.mxu0 %v323_v17  ;;  %1047 = vmatpush3.msra.mxu1 %v323_v17  ;;  %v90_v17 = vld [vmem:[#allocation2 + $0x148] sm:$0xff]  ;;  %v230_v28 = vadd.f32 %v1179_v18, %v159_v12  ;;  %v112_v12 = vld [vmem:[#allocation2 + $0x1f8] sm:$0xff]  ;;  %v298_v13 = vmax.f32 %v234_v60, 0.0  ;;  %v238_v32 = vadd.f32 %v1179_v18, %v167_v15 }
  0x35   :  { %916 = vmatprep.subr.mxu0 %v322_v22  ;;  %1032 = vmatprep.subr.mxu1 %v322_v22  ;;  %v183_v26 = vmul.f32 %v1173_v11, %v112_v12  ;;  %v208_v41 = vadd.f32 %v1179_v18, %v137_v24  ;;  %v105_v12 = vld [vmem:[#allocation2 + $0x1c0] sm:$0xff] }
  0x36   :  { %917 = vmatpush3.msra.mxu0 %v322_v22  ;;  %1048 = vmatpush3.msra.mxu1 %v322_v22  ;;  %v91_v22 = vld [vmem:[#allocation2 + $0x150] sm:$0xff]  ;;  %v294_v43 = vmax.f32 %v230_v28, 0.0  ;;  %v176_v24 = vmul.f32 %v1173_v11, %v105_v12 }
  0x37   :  { %918 = vmatprep.subr.mxu0 %v321_v29  ;;  %1033 = vmatprep.subr.mxu1 %v321_v29  ;;  %v162_v33 = vmul.f32 %v1173_v11, %v91_v22  ;;  %v272_v56 = vmax.f32 %v208_v41, 0.0 }
  0x38   :  { %919 = vmatpush3.msra.mxu0 %v321_v29  ;;  %1049 = vmatpush3.msra.mxu1 %v321_v29  ;;  %v161_v29 = vmul.f32 %v1173_v11, %v90_v17  ;;  %v299_v17 = vmax.f32 %v235_v0, 0.0 }
  0x39   :  { %920 = vmatprep.subr.mxu0 %v320_v35  ;;  %1034 = vmatprep.subr.mxu1 %v320_v35 }
  0x3a   :  { %921 = vmatpush3.msra.mxu0 %v320_v35  ;;  %1050 = vmatpush3.msra.mxu1 %v320_v35  ;;  %v262_v35 = vmax.f32 %v198_v20, 0.0  ;;  %v168_v20 = vmul.f32 %v1173_v11, %v97_v6 }
  0x3b   :  { %922 = vmatprep.subr.mxu0 %v319_v44  ;;  %924 = vmatprep.mubr.f32.mxu0 %v255_v40  ;;  %v201_v40 = vadd.f32 %v1179_v18, %v130_v25  ;;  %v99_v25 = vld [vmem:[#allocation2 + $0x190] sm:$0xff] }
  0x3c   :  { %923 = vmatpush3.msra.mxu0 %v319_v44  ;;  %1035 = vmatprep.subr.mxu1 %v319_v44  ;;  %v170_v38 = vmul.f32 %v1173_v11, %v99_v25  ;;  %v106_v25 = vld [vmem:[#allocation2 + $0x1c8] sm:$0xff] }
  0x3d   :  { %925 = vmatmul.mubr.f32.vlgmr.msra.gmra.mxu0 %v256_v48  ;;  %1051 = vmatpush3.msra.mxu1 %v319_v44  ;;  %v232_v44 = vadd.f32 %v1179_v18, %v161_v29  ;;  %v233_v48 = vadd.f32 %v1179_v18, %v162_v33  ;;  %v265_v55 = vmax.f32 %v201_v40, 0.0  ;;  %v138_v29 = vmul.f32 %v1173_v11, %v67_v16  ;;  %v74_v16 = vld [vmem:[#allocation2 + $0xc8] sm:$0xff] }
  0x3e   :  { %972 = vmatprep.mubr.f32.mxu1 %v287_v52  ;;  %927 = vmatprep.mubr.f32.mxu0 %v257_v53  ;;  %v202_v52 = vadd.f32 %v1179_v18, %v131_v37  ;;  %v133_v53 = vmul.f32 %v1173_v11, %v62_v42  ;;  %v169_v33 = vmul.f32 %v1173_v11, %v98_v21  ;;  %v75_v21 = vld [vmem:[#allocation2 + $0xd0] sm:$0xff] }
  0x3f   :  { %973 = vmatmul.mubr.f32.vlgmr.msra.gmra.mxu1 %v288_v57  ;;  %v134_v57 = vmul.f32 %v1173_v11, %v63_v46  ;;  %v296_v59 = vmax.f32 %v232_v44, 0.0  ;;  %v297_v63 = vmax.f32 %v233_v48, 0.0  ;;  %v239_v37 = vadd.f32 %v1179_v18, %v168_v20 }
  0x40   :  { %975 = vmatprep.mubr.f32.mxu1 %v289_v61  ;;  %v165_v61 = vmul.f32 %v1173_v11, %v94_v50  ;;  %v266_v3 = vmax.f32 %v202_v52, 0.0  ;;  %v204_v4 = vadd.f32 %v1179_v18, %v133_v53  ;;  %v139_v42 = vmul.f32 %v1173_v11, %v68_v30 }
  0x41   :  { %928 = vmatmul.mubr.f32.gmra.mxu0 %v258_v1  ;;  %v166_v1 = vmul.f32 %v1173_v11, %v95_v54  ;;  %v205_v8 = vadd.f32 %v1179_v18, %v134_v57  ;;  %v209_v45 = vadd.f32 %v1179_v18, %v138_v29  ;;  %v140_v46 = vmul.f32 %v1173_v11, %v69_v34  ;;  %v107_v29 = vld [vmem:[#allocation2 + $0x1d0] sm:$0xff] }
  0x42   :  { %930 = vmatprep.mubr.f32.mxu0 %v259_v5  ;;  %v135_v5 = vmul.f32 %v1173_v11, %v64_v58  ;;  %v268_v22 = vmax.f32 %v204_v4, 0.0  ;;  %v302_v48 = vmax.f32 %v238_v32, 0.0  ;;  %v240_v49 = vadd.f32 %v1179_v18, %v169_v33  ;;  %v76_v33 = vld [vmem:[#allocation2 + $0xd8] sm:$0xff] }
  0x43   :  { %976 = vmatmul.mubr.f32.gmra.mxu1 %v290_v9  ;;  %v136_v9 = vmul.f32 %v1173_v11, %v65_v62  ;;  %v303_v52 = vmax.f32 %v239_v37, 0.0  ;;  %v241_v53 = vadd.f32 %v1179_v18, %v170_v38  ;;  %v210_v57 = vadd.f32 %v1179_v18, %v139_v42  ;;  %v77_v38 = vld [vmem:[#allocation2 + $0xe0] sm:$0xff]  ;;  %v108_v42 = vld [vmem:[#allocation2 + $0x1d8] sm:$0xff] }
  0x44   :  { %978 = vmatprep.mubr.f32.mxu1 %v291_v14  ;;  %v236_v14 = vadd.f32 %v1179_v18, %v165_v61  ;;  %v273_v60 = vmax.f32 %v209_v45, 0.0  ;;  %v211_v61 = vadd.f32 %v1179_v18, %v140_v46  ;;  %v304_v0 = vmax.f32 %v240_v49, 0.0  ;;  %v109_v46 = vld [vmem:[#allocation2 + $0x1e0] sm:$0xff] }
  0x45   :  { %931 = vmatmul.mubr.f32.gmra.mxu0 %v260_v19  ;;  %v237_v19 = vadd.f32 %v1179_v18, %v166_v1  ;;  %v207_v28 = vadd.f32 %v1179_v18, %v136_v9  ;;  %v305_v4 = vmax.f32 %v241_v53, 0.0  ;;  %v146_v32 = vmul.f32 %v1173_v11, %v75_v21 }
  0x46   :  { %933 = vmatprep.mubr.f32.mxu0 %v261_v23  ;;  %v206_v23 = vadd.f32 %v1179_v18, %v135_v5  ;;  %v177_v37 = vmul.f32 %v1173_v11, %v106_v25  ;;  %v178_v41 = vmul.f32 %v1173_v11, %v107_v29  ;;  %v147_v45 = vmul.f32 %v1173_v11, %v76_v33 }
  0x47   :  { %979 = vmatmul.mubr.f32.gmra.mxu1 %v292_v27  ;;  %v269_v27 = vmax.f32 %v205_v8, 0.0  ;;  %v301_v36 = vmax.f32 %v237_v19, 0.0  ;;  %v271_v44 = vmax.f32 %v207_v28, 0.0  ;;  %v274_v8 = vmax.f32 %v210_v57, 0.0 }
  0x48   :  { %981 = vmatprep.mubr.f32.mxu1 %v293_v31  ;;  %v300_v31 = vmax.f32 %v236_v14, 0.0  ;;  %v270_v40 = vmax.f32 %v206_v23, 0.0  ;;  %v145_v28 = vmul.f32 %v1173_v11, %v74_v16  ;;  %v148_v49 = vmul.f32 %v1173_v11, %v77_v38 }
  0x49   :  { %934 = vmatmul.mubr.f32.gmra.mxu0 %v262_v35  ;;  %v1252_v35 = vadd.f32 %v1179_v18, %v183_v26  ;;  %v179_v53 = vmul.f32 %v1173_v11, %v108_v42  ;;  %v180_v57 = vmul.f32 %v1173_v11, %v109_v46 }
  0x4a   :  { %936 = vmatprep.mubr.f32.mxu0 %v263_v39  ;;  %v100_v39 = vld [vmem:[#allocation2 + $0x198] sm:$0xff] }
  0x4b   :  { %982 = vmatmul.mubr.f32.gmra.mxu1 %v294_v43  ;;  %v101_v43 = vld [vmem:[#allocation2 + $0x1a0] sm:$0xff]  ;;  %v171_v50 = vmul.f32 %v1173_v11, %v100_v39  ;;  %v318_v25 = vmax.f32 %v1252_v35, 0.0 }
  0x4c   :  { %984 = vmatprep.mubr.f32.mxu1 %v295_v47  ;;  %v70_v47 = vld [vmem:[#allocation2 + $0xa8] sm:$0xff]  ;;  %v172_v54 = vmul.f32 %v1173_v11, %v101_v43 }
  0x4d   :  { %937 = vmatmul.mubr.f32.gmra.mxu0 %v264_v51  ;;  %v71_v51 = vld [vmem:[#allocation2 + $0xb0] sm:$0xff]  ;;  %v141_v58 = vmul.f32 %v1173_v11, %v70_v47  ;;  %v242_v1 = vadd.f32 %v1179_v18, %v171_v50  ;;  %v78_v50 = vld [vmem:[#allocation2 + $0xe8] sm:$0xff] }
  0x4e   :  { %939 = vmatprep.mubr.f32.mxu0 %v265_v55  ;;  %v102_v55 = vld [vmem:[#allocation2 + $0x1a8] sm:$0xff]  ;;  %v142_v62 = vmul.f32 %v1173_v11, %v71_v51  ;;  %v243_v5 = vadd.f32 %v1179_v18, %v172_v54  ;;  %v79_v54 = vld [vmem:[#allocation2 + $0xf0] sm:$0xff] }
  0x4f   :  { %985 = vmatmul.mubr.f32.gmra.mxu1 %v296_v59  ;;  %v103_v59 = vld [vmem:[#allocation2 + $0x1b0] sm:$0xff]  ;;  %v173_v2 = vmul.f32 %v1173_v11, %v102_v55  ;;  %v212_v9 = vadd.f32 %v1179_v18, %v141_v58  ;;  %v110_v58 = vld [vmem:[#allocation2 + $0x1e8] sm:$0xff] }
  0x50   :  { %987 = vmatprep.mubr.f32.mxu1 %v297_v63  ;;  %v72_v63 = vld [vmem:[#allocation2 + $0xb8] sm:$0xff]  ;;  %v174_v6 = vmul.f32 %v1173_v11, %v103_v59  ;;  %v213_v14 = vadd.f32 %v1179_v18, %v142_v62  ;;  %v111_v62 = vld [vmem:[#allocation2 + $0x1f0] sm:$0xff] }
  0x51   :  { %940 = vmatmul.mubr.f32.gmra.mxu0 %v266_v3  ;;  %v73_v3 = vld [vmem:[#allocation2 + $0xc0] sm:$0xff]  ;;  %v143_v10 = vmul.f32 %v1173_v11, %v72_v63  ;;  %v244_v19 = vadd.f32 %v1179_v18, %v173_v2  ;;  %v276_v26 = vmax.f32 %v212_v9, 0.0  ;;  %v80_v2 = vld [vmem:[#allocation2 + $0xf8] sm:$0xff] }
  0x52   :  { %942 = vmatprep.mubr.f32.mxu0 %v267_v7  ;;  %v104_v7 = vld [vmem:[#allocation2 + $0x1b8] sm:$0xff]  ;;  %v144_v15 = vmul.f32 %v1173_v11, %v73_v3  ;;  %v245_v23 = vadd.f32 %v1179_v18, %v174_v6  ;;  %v277_v30 = vmax.f32 %v213_v14, 0.0  ;;  %v151_v12 = vmul.f32 %v1173_v11, %v80_v2 }
  0x53   :  { %988 = vmatmul.mubr.f32.gmra.mxu1 %v298_v13  ;;  %v275_v13 = vmax.f32 %v211_v61, 0.0  ;;  %v175_v20 = vmul.f32 %v1173_v11, %v104_v7  ;;  %v308_v34 = vmax.f32 %v244_v19, 0.0  ;;  %v149_v61 = vmul.f32 %v1173_v11, %v78_v50 }
  0x54   :  { %990 = vmatprep.mubr.f32.mxu1 %v299_v17  ;;  %v306_v17 = vmax.f32 %v242_v1, 0.0  ;;  %v309_v39 = vmax.f32 %v245_v23, 0.0  ;;  %v150_v1 = vmul.f32 %v1173_v11, %v79_v54  ;;  %v251_v7 = vadd.f32 %v1179_v18, %v180_v57  ;;  %v1350_v54 = vld [vmem:[%s1453_s4] ss:$0 sm:$0xff]  ;;  %s1127_s4 = smov [#allocation7]  }
  0x55   :  { %943 = vmatmul.mubr.f32.gmra.mxu0 %v268_v22  ;;  %v307_v22 = vmax.f32 %v243_v5, 0.0  ;;  %v181_v5 = vmul.f32 %v1173_v11, %v110_v58  ;;  %v222_v21 = vadd.f32 %v1179_v18, %v151_v12  ;;  %s796_s7 = sshll.u32 %s1127_s4, 4  ;;  %s797_s7 = int_to_ptr.vmem [resolvable:$true] %s796_s7 }
  0x56   :  { %945 = vmatprep.mubr.f32.mxu0 %v269_v27  ;;  %v214_v27 = vadd.f32 %v1179_v18, %v143_v10  ;;  %v220_v10 = vadd.f32 %v1179_v18, %v149_v61  ;;  %v221_v14 = vadd.f32 %v1179_v18, %v150_v1  ;;  %s1097_s8 = scalar_lea.vmem %s797_s7, 2048  ;;  %p1102_p11 = scmp.lt.s32.totalorder %s797_s7, %s797_s7 }
  0x57   :  { %991 = vmatmul.mubr.f32.gmra.mxu1 %v300_v31  ;;  %v215_v31 = vadd.f32 %v1179_v18, %v144_v15  ;;  %v252_v16 = vadd.f32 %v1179_v18, %v181_v5  ;;  %p1098_p10 = scmp.ne.s32.totalorder %s797_s7, %s1097_s8  ;;  %p1103_p12 = scmp.lt.s32.totalorder %s1097_s8, %s1097_s8 }
  0x58   :  { %993 = vmatprep.mubr.f32.mxu1 %v301_v36  ;;  %v246_v36 = vadd.f32 %v1179_v18, %v175_v20  ;;  %v278_v43 = vmax.f32 %v214_v27, 0.0  ;;  %v284_v20 = vmax.f32 %v220_v10, 0.0 }
  0x59   :  { %946 = vmatmul.mubr.f32.gmra.mxu0 %v270_v40  ;;  %v247_v40 = vadd.f32 %v1179_v18, %v176_v24  ;;  %v279_v47 = vmax.f32 %v215_v31, 0.0  ;;  %v286_v24 = vmax.f32 %v222_v21, 0.0  ;;  %p1104_p13 = por %p1103_p12, %p1102_p11 }
  0x5a   :  { %948 = vmatprep.mubr.f32.mxu0 %v271_v44  ;;  %v216_v44 = vadd.f32 %v1179_v18, %v145_v28  ;;  %v310_v51 = vmax.f32 %v246_v36, 0.0 }
  0x5b   :  { %994 = vmatmul.mubr.f32.gmra.mxu1 %v302_v48  ;;  %v217_v48 = vadd.f32 %v1179_v18, %v146_v32  ;;  %v311_v55 = vmax.f32 %v247_v40, 0.0  ;;  %p1105_p0 = pnand %p1104_p13, %p1098_p10 }
  0x5c   :  { %996 = vmatprep.mubr.f32.mxu1 %v303_v52  ;;  %v248_v52 = vadd.f32 %v1179_v18, %v177_v37  ;;  %v280_v59 = vmax.f32 %v216_v44, 0.0 }
  0x5d   :  { %949 = vmatmul.mubr.f32.gmra.mxu0 %v272_v56  ;;  %v249_v56 = vadd.f32 %v1179_v18, %v178_v41  ;;  %v281_v63 = vmax.f32 %v217_v48, 0.0 }
  0x5e   :  { %951 = vmatprep.mubr.f32.mxu0 %v273_v60  ;;  %v218_v60 = vadd.f32 %v1179_v18, %v147_v45  ;;  %v312_v3 = vmax.f32 %v248_v52, 0.0 }
  0x5f   :  { %997 = vmatmul.mubr.f32.gmra.mxu1 %v304_v0  ;;  %v219_v0 = vadd.f32 %v1179_v18, %v148_v49  ;;  %v313_v6 = vmax.f32 %v249_v56, 0.0 }
  0x60   :  { %999 = vmatprep.mubr.f32.mxu1 %v305_v4  ;;  %v250_v4 = vadd.f32 %v1179_v18, %v179_v53  ;;  %v282_v9 = vmax.f32 %v218_v60, 0.0 }
  0x61   :  { %952 = vmatmul.mubr.f32.gmra.mxu0 %v274_v8  ;;  %v182_v8 = vmul.f32 %v1173_v11, %v111_v62  ;;  %v316_v11 = vmax.f32 %v252_v16, 0.0 }
  0x62   :  { %954 = vmatprep.mubr.f32.mxu0 %v275_v13  ;;  %v283_v13 = vmax.f32 %v219_v0, 0.0  ;;  %v314_v15 = vmax.f32 %v250_v4, 0.0 }
  0x63   :  { %1000 = vmatmul.mubr.f32.gmra.mxu1 %v306_v17  ;;  %v315_v17 = vmax.f32 %v251_v7, 0.0  ;;  %v253_v19 = vadd.f32 %v1179_v18, %v182_v8 }
  0x64   :  { %1002 = vmatprep.mubr.f32.mxu1 %v307_v22  ;;  %v285_v22 = vmax.f32 %v221_v14, 0.0 }
  0x65   :  { %955 = vmatmul.mubr.f32.gmra.mxu0 %v276_v26  ;;  %v317_v23 = vmax.f32 %v253_v19, 0.0 }
  0x66   :  { %957 = vmatprep.mubr.f32.mxu0 %v277_v30 }
  0x67   :  { %1003 = vmatmul.mubr.f32.gmra.mxu1 %v308_v34 }
  0x68   :  { %1005 = vmatprep.mubr.f32.mxu1 %v309_v39 }
  0x69   :  { %958 = vmatmul.mubr.f32.gmra.mxu0 %v278_v43 }
  0x6a   :  { %960 = vmatprep.mubr.f32.mxu0 %v279_v47 }
  0x6b   :  { %1006 = vmatmul.mubr.f32.gmra.mxu1 %v310_v51 }
  0x6c   :  { %1008 = vmatprep.mubr.f32.mxu1 %v311_v55 }
  0x6d   :  { %961 = vmatmul.mubr.f32.gmra.mxu0 %v280_v59 }
  0x6e   :  { %963 = vmatprep.mubr.f32.mxu0 %v281_v63 }
  0x6f   :  { %1009 = vmatmul.mubr.f32.gmra.mxu1 %v312_v3 }
  0x70   :  { %1011 = vmatprep.mubr.f32.mxu1 %v313_v6 }
  0x71   :  { %964 = vmatmul.mubr.f32.gmra.mxu0 %v282_v9 }
  0x72   :  { %966 = vmatprep.mubr.f32.mxu0 %v283_v13 }
  0x73   :  { %1012 = vmatmul.mubr.f32.gmra.mxu1 %v314_v15 }
  0x74   :  { %1014 = vmatprep.mubr.f32.mxu1 %v315_v17 }
  0x75   :  { %967 = vmatmul.mubr.f32.gmra.mxu0 %v284_v20 }
  0x76   :  { %969 = vmatprep.mubr.f32.mxu0 %v285_v22 }
  0x77   :  { %1015 = vmatmul.mubr.f32.gmra.mxu1 %v316_v11 }
  0x78   :  { %1017 = vmatprep.mubr.f32.mxu1 %v317_v23 }
  0x79   :  { %970 = vmatmul.mubr.f32.gmra.mxu0 %v286_v24 }
  0x7b   :  { %1018 = vmatmul.mubr.f32.gmra.mxu1 %v318_v25 }
  0xfd   :  { %v926_v26 = vpop.f32.mrf.mxu0 }
  0xfe   :  { %v414_v59 = vadd.f32 %v926_v26, %v1350_v54 }
  0xff   :  { %v408_v27 = vpop.f32.mrf.mxu0  ;;  %v974_v28 = vpop.f32.mrf.mxu1 }
 0x100   :  { %v409_v61 = vadd.f32 %v1350_v54, %v408_v27  ;;  %v574_v0 = vadd.f32 %v974_v28, %v1350_v54 }
 0x101   :  { %v929_v29 = vpop.f32.mrf.mxu0  ;;  %v568_v18 = vpop.f32.mrf.mxu1 }
 0x102   :  { %v424_v4 = vadd.f32 %v929_v29, %v1350_v54  ;;  %v569_v7 = vadd.f32 %v1350_v54, %v568_v18 }
 0x103   :  { %v418_v30 = vpop.f32.mrf.mxu0  ;;  %v977_v31 = vpop.f32.mrf.mxu1 }
 0x104   :  { %v419_v12 = vadd.f32 %v1350_v54, %v418_v30  ;;  %v584_v13 = vadd.f32 %v977_v31, %v1350_v54 }
 0x105   :  { %v932_v32 = vpop.f32.mrf.mxu0  ;;  %v578_v33 = vpop.f32.mrf.mxu1 }
 0x106   :  { %v434_v22 = vadd.f32 %v932_v32, %v1350_v54  ;;  %v579_v11 = vadd.f32 %v1350_v54, %v578_v33 }
 0x107   :  { %v428_v34 = vpop.f32.mrf.mxu0  ;;  %v980_v36 = vpop.f32.mrf.mxu1 }
 0x108   :  { %v429_v18 = vadd.f32 %v1350_v54, %v428_v34  ;;  %v594_v30 = vadd.f32 %v980_v36, %v1350_v54 }
 0x109   :  { %v1311_v37 = vpop.f32.mrf.mxu0  ;;  %v1313_v38 = vpop.f32.mrf.mxu1 }
 0x10b   :  { %v1315_v39 = vpop.f32.mrf.mxu0  ;;  %v1317_v35 = vpop.f32.mrf.mxu1 }
 0x10d   :  { %v1319_v40 = vpop.f32.mrf.mxu0  ;;  %v1321_v41 = vpop.f32.mrf.mxu1 }
 0x10f   :  { %v1323_v42 = vpop.f32.mrf.mxu0  ;;  %v1325_v43 = vpop.f32.mrf.mxu1 }
 0x111   :  { %v1327_v44 = vpop.f32.mrf.mxu0  ;;  %v1329_v45 = vpop.f32.mrf.mxu1 }
 0x113   :  { %v1331_v46 = vpop.f32.mrf.mxu0  ;;  %v1333_v47 = vpop.f32.mrf.mxu1 }
 0x115   :  { %v1335_v48 = vpop.f32.mrf.mxu0  ;;  %v1337_v49 = vpop.f32.mrf.mxu1 }
 0x117   :  { %v1339_v50 = vpop.f32.mrf.mxu0  ;;  %v1341_v51 = vpop.f32.mrf.mxu1 }
 0x119   :  { %v1343_v52 = vpop.f32.mrf.mxu0  ;;  %v1345_v53 = vpop.f32.mrf.mxu1 }
 0x11b   :  { %v1352_v55 = vpop.f32.mrf.mxu0  ;;  %v1354_v56 = vpop.f32.mrf.mxu1 }
 0x11d   :  { %v950_v57 = vpop.f32.mrf.mxu0  ;;  %v1356_v58 = vpop.f32.mrf.mxu1 }
 0x11e   :  { %v494_v60 = vadd.f32 %v950_v57, %v1350_v54 }
 0x11f   :  { %v488_v62 = vpop.f32.mrf.mxu0  ;;  %v998_v63 = vpop.f32.mrf.mxu1 }
 0x120   :  { %v730_v1 = vmax.f32 %v414_v59, %v494_v60  ;;  %v489_v2 = vadd.f32 %v1350_v54, %v488_v62  ;;  %v654_v3 = vadd.f32 %v998_v63, %v1350_v54  ;;  %v444_v62 = vadd.f32 %v1311_v37, %v1350_v54 }
 0x121   :  { %v953_v5 = vpop.f32.mrf.mxu0  ;;  %v648_v6 = vpop.f32.mrf.mxu1  ;;  %v589_v63 = vadd.f32 %v1350_v54, %v1313_v38 }
 0x122   :  { %v727_v8 = vmax.f32 %v409_v61, %v489_v2  ;;  %v731_v9 = vmax.f32 %v730_v1, %v574_v0  ;;  %v504_v10 = vadd.f32 %v953_v5, %v1350_v54  ;;  %v649_v14 = vadd.f32 %v1350_v54, %v648_v6 }
 0x123   :  { %v498_v15 = vpop.f32.mrf.mxu0  ;;  %v1001_v16 = vpop.f32.mrf.mxu1  ;;  %v439_v5 = vadd.f32 %v1350_v54, %v1315_v39  ;;  %v604_v6 = vadd.f32 %v1317_v35, %v1350_v54 }
 0x124   :  { %v732_v17 = vmax.f32 %v731_v9, %v654_v3  ;;  %v736_v19 = vmax.f32 %v424_v4, %v504_v10  ;;  %v728_v20 = vmax.f32 %v727_v8, %v569_v7  ;;  %v499_v21 = vadd.f32 %v1350_v54, %v498_v15 }
 0x125   :  { %v664_v23 = vadd.f32 %v1001_v16, %v1350_v54  ;;  %v956_v24 = vpop.f32.mrf.mxu0  ;;  %v658_v25 = vpop.f32.mrf.mxu1 }
 0x126   :  { %776 = vst [vmem:[#allocation7 + $0x8] sm:$0xff] %v732_v17  ;;  %v729_v26 = vmax.f32 %v728_v20, %v649_v14  ;;  %v733_v27 = vmax.f32 %v419_v12, %v499_v21  ;;  %v737_v28 = vmax.f32 %v736_v19, %v584_v13  ;;  %v514_v29 = vadd.f32 %v956_v24, %v1350_v54 }
 0x127   :  { %v659_v31 = vadd.f32 %v1350_v54, %v658_v25  ;;  %v508_v57 = vpop.f32.mrf.mxu0  ;;  %v1004_v32 = vpop.f32.mrf.mxu1  ;;  %v454_v13 = vadd.f32 %v1319_v40, %v1350_v54  ;;  %v599_v14 = vadd.f32 %v1350_v54, %v1321_v41  ;;  %v449_v21 = vadd.f32 %v1350_v54, %v1323_v42 }
 0x128   :  { %775 = vst [vmem:[#allocation7] sm:$0xff] %v729_v26  ;;  %v738_v33 = vmax.f32 %v737_v28, %v664_v23  ;;  %v742_v59 = vmax.f32 %v434_v22, %v514_v29  ;;  %v734_v60 = vmax.f32 %v733_v27, %v579_v11  ;;  %v509_v61 = vadd.f32 %v1350_v54, %v508_v57 }
 0x129   :  { %v674_v34 = vadd.f32 %v1004_v32, %v1350_v54  ;;  %v959_v0 = vpop.f32.mrf.mxu0  ;;  %v668_v36 = vpop.f32.mrf.mxu1  ;;  %v614_v22 = vadd.f32 %v1325_v43, %v1350_v54  ;;  %v464_v27 = vadd.f32 %v1327_v44, %v1350_v54  ;;  %v609_v28 = vadd.f32 %v1350_v54, %v1329_v45 }
 0x12a   :  { %778 = vst [vmem:[#allocation7 + $0x18] sm:$0xff] %v738_v33  ;;  %v735_v1 = vmax.f32 %v734_v60, %v659_v31  ;;  %v739_v2 = vmax.f32 %v429_v18, %v509_v61  ;;  %v743_v3 = vmax.f32 %v742_v59, %v594_v30  ;;  %v524_v4 = vadd.f32 %v959_v0, %v1350_v54 }
 0x12b   :  { %v669_v37 = vadd.f32 %v1350_v54, %v668_v36  ;;  %v518_v7 = vpop.f32.mrf.mxu0  ;;  %v1007_v38 = vpop.f32.mrf.mxu1  ;;  %v459_v32 = vadd.f32 %v1350_v54, %v1331_v46  ;;  %v624_v33 = vadd.f32 %v1333_v47, %v1350_v54  ;;  %v619_v0 = vadd.f32 %v1350_v54, %v1337_v49 }
 0x12c   :  { %777 = vst [vmem:[#allocation7 + $0x10] sm:$0xff] %v735_v1  ;;  %v744_v8 = vmax.f32 %v743_v3, %v674_v34  ;;  %v748_v9 = vmax.f32 %v444_v62, %v524_v4  ;;  %v740_v10 = vmax.f32 %v739_v2, %v589_v63  ;;  %v519_v12 = vadd.f32 %v1350_v54, %v518_v7 }
 0x12d   :  { %v684_v39 = vadd.f32 %v1007_v38, %v1350_v54  ;;  %v962_v15 = vpop.f32.mrf.mxu0  ;;  %v678_v35 = vpop.f32.mrf.mxu1  ;;  %v474_v34 = vadd.f32 %v1335_v48, %v1350_v54 }
 0x12e   :  { %780 = vst [vmem:[#allocation7 + $0x28] sm:$0xff] %v744_v8  ;;  %v741_v16 = vmax.f32 %v740_v10, %v669_v37  ;;  %v745_v17 = vmax.f32 %v439_v5, %v519_v12  ;;  %v749_v19 = vmax.f32 %v748_v9, %v604_v6  ;;  %v534_v20 = vadd.f32 %v962_v15, %v1350_v54 }
 0x12f   :  { %v679_v40 = vadd.f32 %v1350_v54, %v678_v35  ;;  %v528_v11 = vpop.f32.mrf.mxu0  ;;  %v1010_v41 = vpop.f32.mrf.mxu1  ;;  %v469_v5 = vadd.f32 %v1350_v54, %v1339_v50  ;;  %v634_v6 = vadd.f32 %v1341_v51, %v1350_v54  ;;  %v484_v10 = vadd.f32 %v1343_v52, %v1350_v54 }
 0x130   :  { %779 = vst [vmem:[#allocation7 + $0x20] sm:$0xff] %v741_v16  ;;  %v750_v23 = vmax.f32 %v749_v19, %v684_v39  ;;  %v754_v24 = vmax.f32 %v454_v13, %v534_v20  ;;  %v746_v25 = vmax.f32 %v745_v17, %v599_v14  ;;  %v529_v26 = vadd.f32 %v1350_v54, %v528_v11 }
 0x131   :  { %v694_v42 = vadd.f32 %v1010_v41, %v1350_v54  ;;  %v965_v29 = vpop.f32.mrf.mxu0  ;;  %v688_v43 = vpop.f32.mrf.mxu1  ;;  %v629_v12 = vadd.f32 %v1350_v54, %v1345_v53  ;;  %v479_v16 = vadd.f32 %v1350_v54, %v1352_v55  ;;  %v644_v17 = vadd.f32 %v1354_v56, %v1350_v54 }
 0x132   :  { %782 = vst [vmem:[#allocation7 + $0x38] sm:$0xff] %v750_v23  ;;  %v747_v18 = vmax.f32 %v746_v25, %v679_v40  ;;  %v751_v30 = vmax.f32 %v449_v21, %v529_v26  ;;  %v755_v31 = vmax.f32 %v754_v24, %v614_v22  ;;  %v544_v57 = vadd.f32 %v965_v29, %v1350_v54 }
 0x133   :  { %v689_v44 = vadd.f32 %v1350_v54, %v688_v43  ;;  %v538_v59 = vpop.f32.mrf.mxu0  ;;  %v1013_v45 = vpop.f32.mrf.mxu1  ;;  %v639_v23 = vadd.f32 %v1350_v54, %v1356_v58 }
 0x134   :  { %781 = vst [vmem:[#allocation7 + $0x30] sm:$0xff] %v747_v18  ;;  %v756_v60 = vmax.f32 %v755_v31, %v694_v42  ;;  %v760_v61 = vmax.f32 %v464_v27, %v544_v57  ;;  %v752_v62 = vmax.f32 %v751_v30, %v609_v28  ;;  %v539_v63 = vadd.f32 %v1350_v54, %v538_v59 }
 0x135   :  { %v704_v46 = vadd.f32 %v1013_v45, %v1350_v54  ;;  %v968_v36 = vpop.f32.mrf.mxu0  ;;  %v698_v47 = vpop.f32.mrf.mxu1 }
 0x136   :  { %784 = vst [vmem:[#allocation7 + $0x48] sm:$0xff] %v756_v60  ;;  %v753_v1 = vmax.f32 %v752_v62, %v689_v44  ;;  %v757_v2 = vmax.f32 %v459_v32, %v539_v63  ;;  %v761_v3 = vmax.f32 %v760_v61, %v624_v33  ;;  %v554_v4 = vadd.f32 %v968_v36, %v1350_v54 }
 0x137   :  { %v699_v48 = vadd.f32 %v1350_v54, %v698_v47  ;;  %v548_v37 = vpop.f32.mrf.mxu0  ;;  %v1016_v49 = vpop.f32.mrf.mxu1 }
 0x138   :  { %783 = vst [vmem:[#allocation7 + $0x40] sm:$0xff] %v753_v1  ;;  %v762_v7 = vmax.f32 %v761_v3, %v704_v46  ;;  %v766_v38 = vmax.f32 %v474_v34, %v554_v4  ;;  %v758_v8 = vmax.f32 %v757_v2, %v619_v0  ;;  %v549_v9 = vadd.f32 %v1350_v54, %v548_v37 }
 0x139   :  { %v714_v50 = vadd.f32 %v1016_v49, %v1350_v54  ;;  %v971_v13 = vpop.f32.mrf.mxu0  ;;  %v708_v51 = vpop.f32.mrf.mxu1 }
 0x13a   :  { %786 = vst [vmem:[#allocation7 + $0x58] sm:$0xff] %v762_v7  ;;  %v759_v14 = vmax.f32 %v758_v8, %v699_v48  ;;  %v763_v39 = vmax.f32 %v469_v5, %v549_v9  ;;  %v767_v15 = vmax.f32 %v766_v38, %v634_v6  ;;  %v564_v35 = vadd.f32 %v971_v13, %v1350_v54 }
 0x13b   :  { %v709_v52 = vadd.f32 %v1350_v54, %v708_v51  ;;  %v558_v19 = vpop.f32.mrf.mxu0  ;;  %v1019_v53 = vpop.f32.mrf.mxu1 }
 0x13c   :  { %785 = vst [vmem:[#allocation7 + $0x50] sm:$0xff] %v759_v14  ;;  %v768_v20 = vmax.f32 %v767_v15, %v714_v50  ;;  %v772_v21 = vmax.f32 %v484_v10, %v564_v35  ;;  %v764_v22 = vmax.f32 %v763_v39, %v629_v12  ;;  %v559_v40 = vadd.f32 %v1350_v54, %v558_v19 }
 0x13d   :  { %v724_v11 = vadd.f32 %v1019_v53, %v1350_v54  ;;  %v718_v41 = vpop.f32.mrf.mxu1 }
 0x13e   :  { %788 = vst [vmem:[#allocation7 + $0x68] sm:$0xff] %v768_v20  ;;  %v765_v55 = vmax.f32 %v764_v22, %v709_v52  ;;  %v769_v24 = vmax.f32 %v479_v16, %v559_v40  ;;  %v773_v56 = vmax.f32 %v772_v21, %v644_v17  ;;  %v719_v26 = vadd.f32 %v1350_v54, %v718_v41 }
 0x140   :  { %787 = vst [vmem:[#allocation7 + $0x60] sm:$0xff] %v765_v55  ;;  %v774_v25 = vmax.f32 %v773_v56, %v724_v11  ;;  %v770_v27 = vmax.f32 %v769_v24, %v639_v23 }
 0x142   :  { %790 = vst [vmem:[#allocation7 + $0x78] sm:$0xff] %v774_v25  ;;  %v771_v28 = vmax.f32 %v770_v27, %v719_v26 }
 0x144   :  { %789 = vst [vmem:[#allocation7 + $0x70] sm:$0xff] %v771_v28 }
 0x145   :  { %1108 = shalt.err (!%p1105_p0)
}
 0x146   :  { %802 = dma.vmem_to_hbm [thread:$0]  %s797_s7, 2048, %s1454_s5, [#allocation4], %s1124_s21, %s1124_s21, %s1125_s22  }
 0x147   :  { %1121 = dma.done.wait [#allocation4], 2048  }
 0x148   :  { %1122 = vsyncadd [#allocation4], 4294965248 }
 0x149   :  { %806 = vsyncpa [#allocation3], 1 }
 0x14a   :  { %807 = vsyncpa [#allocation6], 1 }
 0x14b   :  { %808 = vsyncpa [#allocation4], 1 }

</bundles_post_ra>
